<compile_context>
chip_gen: v7x
topology: tpu7x:2x2x1
jax: 0.10.0
libtpu: 0.0.40
codegen_flags: <defaults>
</compile_context>

<pallas_src>
import functools

import jax
import jax.numpy as jnp
from jax import lax
from jax.experimental import pallas as pl
from jax.experimental.pallas import tpu as pltpu

NEG_SLOPE = 0.01  # torch.nn.functional.leaky_relu default


def _leaky_relu(v):
    return jnp.where(v > 0, v, NEG_SLOPE * v)


def _make_mlp_kernel(n_layers):
    """Kernel for n_layers leaky-relu Linear layers + the two 1-wide heads."""

    # Contract x's feature dim (axis 1) with the weight's `in` dim (axis 1):
    # (out, in) . (bb, in) -> (out, bb).  Batch stays on lanes; no transpose.
    DN = (((1,), (1,)), ((), ()))

    def kernel(*refs):
        x_ref, out_ref = refs[0], refs[-1]
        p = refs[1:-1]
        layer_refs = [(p[2 * i], p[2 * i + 1]) for i in range(n_layers)]
        wh_ref, wd_ref, bhd_ref = p[2 * n_layers:]

        x = x_ref[...]                       # (bb, d), matmul dtype
        cdtype = x.dtype

        # data_fc head: depends only on x -> can issue early / overlap chain.
        head_x = lax.dot_general(wd_ref[...], x, DN,
                                 preferred_element_type=jnp.float32)   # (1, bb)

        w0_ref, b0_ref = layer_refs[0]
        h = lax.dot_general(w0_ref[...], x, DN,
                            preferred_element_type=jnp.float32)        # (h0, bb)
        h = _leaky_relu(h + b0_ref[...])                               # f32 VPU
        for w_ref, b_ref in layer_refs[1:]:
            h = jnp.dot(w_ref[...], h.astype(cdtype),
                        preferred_element_type=jnp.float32)
            h = _leaky_relu(h + b_ref[...])

        out = (jnp.dot(wh_ref[...], h.astype(cdtype),
                       preferred_element_type=jnp.float32)
               + head_x + bhd_ref[...])                                # (1, bb)
        out_ref[...] = out.astype(out_ref.dtype)

    return kernel


def init_net_params(key, d, hidden_sizes=(128, 64, 32, 16), dtype=jnp.float32):
    """PyTorch-style uniform(+-1/sqrt(fan_in)) init; weights kept as (out, in)."""
    keys = jax.random.split(key, 2 * (len(hidden_sizes) + 2))
    ki = 0

    def linear(fan_in, fan_out):
        nonlocal ki
        bound = float(fan_in) ** -0.5
        w = jax.random.uniform(keys[ki], (fan_out, fan_in), dtype,
                               minval=-bound, maxval=bound)
        b = jax.random.uniform(keys[ki + 1], (fan_out, 1), dtype,
                               minval=-bound, maxval=bound)
        ki += 2
        return w, b

    sizes = [d] + list(hidden_sizes)
    layers = [linear(sizes[i], sizes[i + 1]) for i in range(len(hidden_sizes))]
    return {
        "layers": layers,                         # self.first + self.hidden_layers
        "hidden_fc": linear(hidden_sizes[-1], 1),
        "data_fc": linear(d, 1),
    }


def _round_up(n, m):
    return ((n + m - 1) // m) * m


@functools.partial(jax.jit, static_argnames=("block_b_max", "matmul_dtype"))
def net_forward(x, params, block_b_max=2048, matmul_dtype=jnp.bfloat16):
    """Pallas implementation of Net.forward.  x: (B, d) or (d,)."""
    if x.ndim == 1:
        x = x.reshape(1, -1)
    out_dtype = x.dtype
    B, d = x.shape

    # ---- batch-tile selection ---------------------------------------------
    b8 = _round_up(B, 8)
    if b8 <= 512:
        block_b = b8          # single small tile; splitting only adds overhead
    else:
        # Aim for grid >= 2 so the 'parallel' axis shards across v7x's two
        # TensorCores; tile is a multiple of 512 so lane widths stay multiples
        # of 128.  Cap at block_b_max (amortizes per-step overhead; all live
        # activations stay far below VMEM limits on every generation).
        block_b = min(block_b_max, _round_up((b8 + 1) // 2, 512))
    B_pad = _round_up(b8, block_b)

    # x is the only O(B) stream: cast to the matmul dtype before padding/DMA.
    x = x.astype(matmul_dtype)
    if B_pad != B:
        x = jnp.pad(x, ((0, B_pad - B), (0, 0)))

    # ---- parameters: weights in matmul dtype, biases in f32 ----------------
    plist = []
    weights = []
    for (w, b) in params["layers"]:
        plist += [w.astype(matmul_dtype), b.astype(jnp.float32)]
        weights.append(w)
    wh, bh = params["hidden_fc"]
    wd, bd = params["data_fc"]
    plist += [wh.astype(matmul_dtype), wd.astype(matmul_dtype),
              (bh + bd).astype(jnp.float32)]          # heads' biases pre-summed
    weights += [wh, wd]
    plist = tuple(plist)

    n_layers = len(params["layers"])
    grid = (B_pad // block_b,)

    def const_spec(arr):
        # Full block + constant index map: DMA'd once, VMEM-resident across
        # all grid steps (Pallas skips re-fetch when the block index repeats).
        return pl.BlockSpec(arr.shape, lambda i: (0, 0))

    flops = 2 * B_pad * sum(int(w.size) for w in weights)
    bytes_accessed = (
        int(x.size) * jnp.dtype(matmul_dtype).itemsize
        + sum(int(p.size) * p.dtype.itemsize for p in plist)
        + B_pad * jnp.dtype(out_dtype).itemsize)
    cost = pl.CostEstimate(flops=int(flops), transcendentals=0,
                           bytes_accessed=int(bytes_accessed))

    out = pl.pallas_call(
        _make_mlp_kernel(n_layers),
        out_shape=jax.ShapeDtypeStruct((1, B_pad), out_dtype),
        grid_spec=pltpu.PrefetchScalarGridSpec(
            num_scalar_prefetch=0,
            grid=grid,
            in_specs=[pl.BlockSpec((block_b, d), lambda i: (i, 0))]   # x tile
                     + [const_spec(p) for p in plist],
            out_specs=pl.BlockSpec((1, block_b), lambda i: (0, i)),   # lane-dense
        ),
        compiler_params=pltpu.CompilerParams(
            dimension_semantics=("parallel",)),
        cost_estimate=cost,
    )(x, *plist)

    return out[0, :B].reshape(B, 1)


def net_forward_ref(x, params):
    """Pure-JAX reference (full f32 precision) for correctness checks."""
    if x.ndim == 1:
        x = x.reshape(1, -1)
    hp = jax.lax.Precision.HIGHEST
    h = x
    for (w, b) in params["layers"]:
        z = jnp.dot(h, w.T, precision=hp) + b.T
        h = jnp.where(z > 0, z, NEG_SLOPE * z)
    wh, bh = params["hidden_fc"]
    wd, bd = params["data_fc"]
    return (jnp.dot(h, wh.T, precision=hp) + bh.T) + (jnp.dot(x, wd.T, precision=hp) + bd.T)


if __name__ == "__main__":
    key = jax.random.PRNGKey(0)
    k_param, k_x1, k_x2 = jax.random.split(key, 3)

    d = 32
    hidden_sizes = (128, 64, 32, 16)
    params = init_net_params(k_param, d, hidden_sizes)

    # 1) Small batch, f32 matmuls: tight-tolerance correctness check.
    x_small = jax.random.normal(k_x1, (8, d), dtype=jnp.float32)
    ref_small = net_forward_ref(x_small, params)

    out_f32 = net_forward(x_small, params, matmul_dtype=jnp.float32)
    jax.block_until_ready(out_f32)
    assert out_f32.shape == (8, 1), out_f32.shape
    assert jnp.allclose(out_f32, ref_small, atol=1e-3, rtol=1e-3), (
        float(jnp.max(jnp.abs(out_f32 - ref_small))))

    # 2) Same batch, default bf16 matmul operands (f32 accumulation).
    out_bf16 = net_forward(x_small, params)
    jax.block_until_ready(out_bf16)
    assert out_bf16.shape == (8, 1), out_bf16.shape
    assert jnp.allclose(out_bf16, ref_small, atol=5e-2, rtol=5e-2), (
        float(jnp.max(jnp.abs(out_bf16 - ref_small))))

    # 3) Larger ragged batch: exercises grid >= 2 (v7x megacore path) + padding.
    x_big = jax.random.normal(k_x2, (1200, d), dtype=jnp.float32)
    out_big = net_forward(x_big, params, matmul_dtype=jnp.float32)
    jax.block_until_ready(out_big)
    ref_big = net_forward_ref(x_big, params)
    assert out_big.shape == (1200, 1), out_big.shape
    assert jnp.allclose(out_big, ref_big, atol=1e-3, rtol=1e-3), (
        float(jnp.max(jnp.abs(out_big - ref_big))))

    print("KERNEL_OK")
</pallas_src>

<mosaic_0001>
module attributes {stable_mosaic.version = 11 : i64} {
  func.func @kernel(%arg0: i32, %arg1: memref<8x32xf32, #tpu.memory_space<vmem>>, %arg2: memref<128x32xf32, #tpu.memory_space<vmem>>, %arg3: memref<128x1xf32, #tpu.memory_space<vmem>>, %arg4: memref<64x128xf32, #tpu.memory_space<vmem>>, %arg5: memref<64x1xf32, #tpu.memory_space<vmem>>, %arg6: memref<32x64xf32, #tpu.memory_space<vmem>>, %arg7: memref<32x1xf32, #tpu.memory_space<vmem>>, %arg8: memref<16x32xf32, #tpu.memory_space<vmem>>, %arg9: memref<16x1xf32, #tpu.memory_space<vmem>>, %arg10: memref<1x16xf32, #tpu.memory_space<vmem>>, %arg11: memref<1x32xf32, #tpu.memory_space<vmem>>, %arg12: memref<1x1xf32, #tpu.memory_space<vmem>>, %arg13: memref<1x8xf32, #tpu.memory_space<vmem>>) attributes {dimension_semantics = [#tpu.dimension_semantics<parallel>], iteration_bounds = array<i64: 1>, scalar_prefetch = 0 : i64, scratch_operands = 0 : i64, tpu.core_type = #tpu.core_type<tc>, window_params = [{transform_indices = @transform_0, window_bounds = array<i64: 8, 32>}, {pipeline_mode = #tpu.pipeline_mode<synchronous>, transform_indices = @transform_1, window_bounds = array<i64: 128, 32>}, {pipeline_mode = #tpu.pipeline_mode<synchronous>, transform_indices = @transform_2, window_bounds = array<i64: 128, 1>}, {pipeline_mode = #tpu.pipeline_mode<synchronous>, transform_indices = @transform_3, window_bounds = array<i64: 64, 128>}, {pipeline_mode = #tpu.pipeline_mode<synchronous>, transform_indices = @transform_4, window_bounds = array<i64: 64, 1>}, {pipeline_mode = #tpu.pipeline_mode<synchronous>, transform_indices = @transform_5, window_bounds = array<i64: 32, 64>}, {pipeline_mode = #tpu.pipeline_mode<synchronous>, transform_indices = @transform_6, window_bounds = array<i64: 32, 1>}, {pipeline_mode = #tpu.pipeline_mode<synchronous>, transform_indices = @transform_7, window_bounds = array<i64: 16, 32>}, {pipeline_mode = #tpu.pipeline_mode<synchronous>, transform_indices = @transform_8, window_bounds = array<i64: 16, 1>}, {pipeline_mode = #tpu.pipeline_mode<synchronous>, transform_indices = @transform_9, window_bounds = array<i64: 1, 16>}, {pipeline_mode = #tpu.pipeline_mode<synchronous>, transform_indices = @transform_10, window_bounds = array<i64: 1, 32>}, {pipeline_mode = #tpu.pipeline_mode<synchronous>, transform_indices = @transform_11, window_bounds = array<i64: 1, 1>}, {transform_indices = @transform_12, window_bounds = array<i64: 1, 8>}]} {
    %c0 = arith.constant 0 : index
    %c0_0 = arith.constant 0 : index
    %0 = vector.load %arg1[%c0, %c0_0] : memref<8x32xf32, #tpu.memory_space<vmem>>, vector<8x32xf32>
    %c0_1 = arith.constant 0 : index
    %c0_2 = arith.constant 0 : index
    %1 = vector.load %arg11[%c0_1, %c0_2] : memref<1x32xf32, #tpu.memory_space<vmem>>, vector<1x32xf32>
    %cst = arith.constant dense<0.000000e+00> : vector<1x8xf32>
    %2 = tpu.matmul %1, %0, %cst {dimension_numbers = #tpu.dot_dimension_numbers<[1], [1], [0], [0], [0, 0, 1, 0], [], []>} : vector<1x32xf32>, vector<8x32xf32>, vector<1x8xf32> -> vector<1x8xf32>
    %c0_3 = arith.constant 0 : index
    %c0_4 = arith.constant 0 : index
    %3 = vector.load %arg2[%c0_3, %c0_4] : memref<128x32xf32, #tpu.memory_space<vmem>>, vector<128x32xf32>
    %cst_5 = arith.constant dense<0.000000e+00> : vector<128x8xf32>
    %4 = tpu.matmul %3, %0, %cst_5 {dimension_numbers = #tpu.dot_dimension_numbers<[1], [1], [0], [0], [0, 0, 1, 0], [], []>} : vector<128x32xf32>, vector<8x32xf32>, vector<128x8xf32> -> vector<128x8xf32>
    %c0_6 = arith.constant 0 : index
    %c0_7 = arith.constant 0 : index
    %5 = vector.load %arg3[%c0_6, %c0_7] : memref<128x1xf32, #tpu.memory_space<vmem>>, vector<128x1xf32>
    %6 = vector.broadcast %5 : vector<128x1xf32> to vector<128x8xf32>
    %7 = arith.addf %4, %6 : vector<128x8xf32>
    %cst_8 = arith.constant 0.000000e+00 : f32
    %8 = vector.broadcast %cst_8 : f32 to vector<128x8xf32>
    %9 = arith.cmpf ogt, %7, %8 : vector<128x8xf32>
    %cst_9 = arith.constant 0.00999999977 : f32
    %10 = vector.broadcast %cst_9 : f32 to vector<128x8xf32>
    %11 = arith.mulf %10, %7 : vector<128x8xf32>
    %12 = arith.select %9, %7, %11 : vector<128x8xi1>, vector<128x8xf32>
    %c0_10 = arith.constant 0 : index
    %c0_11 = arith.constant 0 : index
    %13 = vector.load %arg4[%c0_10, %c0_11] : memref<64x128xf32, #tpu.memory_space<vmem>>, vector<64x128xf32>
    %cst_12 = arith.constant dense<0.000000e+00> : vector<64x8xf32>
    %14 = tpu.matmul %13, %12, %cst_12 {dimension_numbers = #tpu.dot_dimension_numbers<[1], [0], [0], [1], [0, 0, 1, 1], [], []>} : vector<64x128xf32>, vector<128x8xf32>, vector<64x8xf32> -> vector<64x8xf32>
    %c0_13 = arith.constant 0 : index
    %c0_14 = arith.constant 0 : index
    %15 = vector.load %arg5[%c0_13, %c0_14] : memref<64x1xf32, #tpu.memory_space<vmem>>, vector<64x1xf32>
    %16 = vector.broadcast %15 : vector<64x1xf32> to vector<64x8xf32>
    %17 = arith.addf %14, %16 : vector<64x8xf32>
    %cst_15 = arith.constant 0.000000e+00 : f32
    %18 = vector.broadcast %cst_15 : f32 to vector<64x8xf32>
    %19 = arith.cmpf ogt, %17, %18 : vector<64x8xf32>
    %cst_16 = arith.constant 0.00999999977 : f32
    %20 = vector.broadcast %cst_16 : f32 to vector<64x8xf32>
    %21 = arith.mulf %20, %17 : vector<64x8xf32>
    %22 = arith.select %19, %17, %21 : vector<64x8xi1>, vector<64x8xf32>
    %c0_17 = arith.constant 0 : index
    %c0_18 = arith.constant 0 : index
    %23 = vector.load %arg6[%c0_17, %c0_18] : memref<32x64xf32, #tpu.memory_space<vmem>>, vector<32x64xf32>
    %cst_19 = arith.constant dense<0.000000e+00> : vector<32x8xf32>
    %24 = tpu.matmul %23, %22, %cst_19 {dimension_numbers = #tpu.dot_dimension_numbers<[1], [0], [0], [1], [0, 0, 1, 1], [], []>} : vector<32x64xf32>, vector<64x8xf32>, vector<32x8xf32> -> vector<32x8xf32>
    %c0_20 = arith.constant 0 : index
    %c0_21 = arith.constant 0 : index
    %25 = vector.load %arg7[%c0_20, %c0_21] : memref<32x1xf32, #tpu.memory_space<vmem>>, vector<32x1xf32>
    %26 = vector.broadcast %25 : vector<32x1xf32> to vector<32x8xf32>
    %27 = arith.addf %24, %26 : vector<32x8xf32>
    %cst_22 = arith.constant 0.000000e+00 : f32
    %28 = vector.broadcast %cst_22 : f32 to vector<32x8xf32>
    %29 = arith.cmpf ogt, %27, %28 : vector<32x8xf32>
    %cst_23 = arith.constant 0.00999999977 : f32
    %30 = vector.broadcast %cst_23 : f32 to vector<32x8xf32>
    %31 = arith.mulf %30, %27 : vector<32x8xf32>
    %32 = arith.select %29, %27, %31 : vector<32x8xi1>, vector<32x8xf32>
    %c0_24 = arith.constant 0 : index
    %c0_25 = arith.constant 0 : index
    %33 = vector.load %arg8[%c0_24, %c0_25] : memref<16x32xf32, #tpu.memory_space<vmem>>, vector<16x32xf32>
    %cst_26 = arith.constant dense<0.000000e+00> : vector<16x8xf32>
    %34 = tpu.matmul %33, %32, %cst_26 {dimension_numbers = #tpu.dot_dimension_numbers<[1], [0], [0], [1], [0, 0, 1, 1], [], []>} : vector<16x32xf32>, vector<32x8xf32>, vector<16x8xf32> -> vector<16x8xf32>
    %c0_27 = arith.constant 0 : index
    %c0_28 = arith.constant 0 : index
    %35 = vector.load %arg9[%c0_27, %c0_28] : memref<16x1xf32, #tpu.memory_space<vmem>>, vector<16x1xf32>
    %36 = vector.broadcast %35 : vector<16x1xf32> to vector<16x8xf32>
    %37 = arith.addf %34, %36 : vector<16x8xf32>
    %cst_29 = arith.constant 0.000000e+00 : f32
    %38 = vector.broadcast %cst_29 : f32 to vector<16x8xf32>
    %39 = arith.cmpf ogt, %37, %38 : vector<16x8xf32>
    %cst_30 = arith.constant 0.00999999977 : f32
    %40 = vector.broadcast %cst_30 : f32 to vector<16x8xf32>
    %41 = arith.mulf %40, %37 : vector<16x8xf32>
    %42 = arith.select %39, %37, %41 : vector<16x8xi1>, vector<16x8xf32>
    %c0_31 = arith.constant 0 : index
    %c0_32 = arith.constant 0 : index
    %43 = vector.load %arg10[%c0_31, %c0_32] : memref<1x16xf32, #tpu.memory_space<vmem>>, vector<1x16xf32>
    %cst_33 = arith.constant dense<0.000000e+00> : vector<1x8xf32>
    %44 = tpu.matmul %43, %42, %cst_33 {dimension_numbers = #tpu.dot_dimension_numbers<[1], [0], [0], [1], [0, 0, 1, 1], [], []>} : vector<1x16xf32>, vector<16x8xf32>, vector<1x8xf32> -> vector<1x8xf32>
    %45 = arith.addf %44, %2 : vector<1x8xf32>
    %c0_34 = arith.constant 0 : index
    %c0_35 = arith.constant 0 : index
    %46 = vector.load %arg12[%c0_34, %c0_35] : memref<1x1xf32, #tpu.memory_space<vmem>>, vector<1x1xf32>
    %47 = vector.broadcast %46 : vector<1x1xf32> to vector<1x8xf32>
    %48 = arith.addf %45, %47 : vector<1x8xf32>
    %c0_36 = arith.constant 0 : index
    %c0_37 = arith.constant 0 : index
    %49 = vector.load %arg13[%c0_36, %c0_37] : memref<1x8xf32, #tpu.memory_space<vmem>>, vector<1x8xf32>
    tpu.vector_store %arg13[%c0_36, %c0_37], %48 {strides = array<i32>} : memref<1x8xf32, #tpu.memory_space<vmem>>, vector<1x8xf32>,
    return
  }
  func.func @transform_0(%arg0: i32) -> (i32, i32) {
    %c0_i32 = arith.constant 0 : i32
    %c0_i32_0 = arith.constant 0 : i32
    return %arg0, %c0_i32 : i32, i32
  }
  func.func @transform_1(%arg0: i32) -> (i32, i32) {
    %c0_i32 = arith.constant 0 : i32
    %c0_i32_0 = arith.constant 0 : i32
    %c0_i32_1 = arith.constant 0 : i32
    return %c0_i32, %c0_i32_0 : i32, i32
  }
  func.func @transform_2(%arg0: i32) -> (i32, i32) {
    %c0_i32 = arith.constant 0 : i32
    %c0_i32_0 = arith.constant 0 : i32
    %c0_i32_1 = arith.constant 0 : i32
    return %c0_i32, %c0_i32_0 : i32, i32
  }
  func.func @transform_3(%arg0: i32) -> (i32, i32) {
    %c0_i32 = arith.constant 0 : i32
    %c0_i32_0 = arith.constant 0 : i32
    %c0_i32_1 = arith.constant 0 : i32
    return %c0_i32, %c0_i32_0 : i32, i32
  }
  func.func @transform_4(%arg0: i32) -> (i32, i32) {
    %c0_i32 = arith.constant 0 : i32
    %c0_i32_0 = arith.constant 0 : i32
    %c0_i32_1 = arith.constant 0 : i32
    return %c0_i32, %c0_i32_0 : i32, i32
  }
  func.func @transform_5(%arg0: i32) -> (i32, i32) {
    %c0_i32 = arith.constant 0 : i32
    %c0_i32_0 = arith.constant 0 : i32
    %c0_i32_1 = arith.constant 0 : i32
    return %c0_i32, %c0_i32_0 : i32, i32
  }
  func.func @transform_6(%arg0: i32) -> (i32, i32) {
    %c0_i32 = arith.constant 0 : i32
    %c0_i32_0 = arith.constant 0 : i32
    %c0_i32_1 = arith.constant 0 : i32
    return %c0_i32, %c0_i32_0 : i32, i32
  }
  func.func @transform_7(%arg0: i32) -> (i32, i32) {
    %c0_i32 = arith.constant 0 : i32
    %c0_i32_0 = arith.constant 0 : i32
    %c0_i32_1 = arith.constant 0 : i32
    return %c0_i32, %c0_i32_0 : i32, i32
  }
  func.func @transform_8(%arg0: i32) -> (i32, i32) {
    %c0_i32 = arith.constant 0 : i32
    %c0_i32_0 = arith.constant 0 : i32
    %c0_i32_1 = arith.constant 0 : i32
    return %c0_i32, %c0_i32_0 : i32, i32
  }
  func.func @transform_9(%arg0: i32) -> (i32, i32) {
    %c0_i32 = arith.constant 0 : i32
    %c0_i32_0 = arith.constant 0 : i32
    %c0_i32_1 = arith.constant 0 : i32
    return %c0_i32, %c0_i32_0 : i32, i32
  }
  func.func @transform_10(%arg0: i32) -> (i32, i32) {
    %c0_i32 = arith.constant 0 : i32
    %c0_i32_0 = arith.constant 0 : i32
    %c0_i32_1 = arith.constant 0 : i32
    return %c0_i32, %c0_i32_0 : i32, i32
  }
  func.func @transform_11(%arg0: i32) -> (i32, i32) {
    %c0_i32 = arith.constant 0 : i32
    %c0_i32_0 = arith.constant 0 : i32
    %c0_i32_1 = arith.constant 0 : i32
    return %c0_i32, %c0_i32_0 : i32, i32
  }
  func.func @transform_12(%arg0: i32) -> (i32, i32) {
    %c0_i32 = arith.constant 0 : i32
    %c0_i32_0 = arith.constant 0 : i32
    return %c0_i32, %arg0 : i32, i32
  }
}

</mosaic_0001>

<bundles_post_ra>
// kernel: net_forward.1
= control target key start
LH: loop header
LB: loop body
LE: loop exit
PB: predicated region body
PF: predicated region fallthrough
CT: control target
= control target key end

     0   :  { %s1610_s0 = inlined_call_operand.vmem [shape: f32[8,32], index: 0, kind: input, shape index: {}]   ;;  %s1611_s1 = inlined_call_operand.vmem [shape: f32[128,32], index: 1, kind: input, shape index: {}]   ;;  %s1612_s2 = inlined_call_operand.vmem [shape: f32[128,1], index: 2, kind: input, shape index: {}]   ;;  %s1613_s3 = inlined_call_operand.vmem [shape: f32[64,128], index: 3, kind: input, shape index: {}]   ;;  %s1614_s4 = inlined_call_operand.vmem [shape: f32[64,1], index: 4, kind: input, shape index: {}]   ;;  %s1615_s5 = inlined_call_operand.vmem [shape: f32[32,64], index: 5, kind: input, shape index: {}]   ;;  %s1616_s6 = inlined_call_operand.vmem [shape: f32[32,1], index: 6, kind: input, shape index: {}]   ;;  %s1617_s7 = inlined_call_operand.vmem [shape: f32[16,32], index: 7, kind: input, shape index: {}]   ;;  %s1618_s8 = inlined_call_operand.vmem [shape: f32[16,1], index: 8, kind: input, shape index: {}]   ;;  %s1619_s9 = inlined_call_operand.vmem [shape: f32[1,16], index: 9, kind: input, shape index: {}]   ;;  %s1620_s10 = inlined_call_operand.vmem [shape: f32[1,32], index: 10, kind: input, shape index: {}]   ;;  %s1621_s11 = inlined_call_operand.<no memory space> [shape: f32[1,1], index: 11, kind: input, shape index: {}]   ;;  %s1622_s12 = inlined_call_operand.hbm [shape: f32[1,8], index: 12, kind: output, shape index: {}]  }
   0x1   :  { %v17_v0 = vstv %s1621_s11 }
   0x2   :  { %18 = vst [vmem:[#allocation2] sm:$0x1] %v17_v0 }
   0x3   :  { %v1373_v1 = vld [vmem:[%s1610_s0] sm:$0xff]  ;;  %vm46_vm0 = vcmask 261120   ;;  %v124_v3 = vld [vmem:[%s1611_s1 + $0x8] sm:$0xff]  ;;  %v1297_v4 = vmov 0   ;;  %v125_v5 = vld [vmem:[%s1611_s1 + $0x10] sm:$0xff] }
   0x4   :  { %v123_v2 = vld [vmem:[%s1611_s1] sm:$0xff]  ;;  %1097 = vmatprep.subr.msk.mxu1 %vm46_vm0, %v1373_v1  ;;  %1271 = vset.pattern.permute.xlu0 %v1297_v4  ;;  %v126_v7 = vld [vmem:[%s1611_s1 + $0x18] sm:$0xff]  ;;  %v140_v8 = vld [vmem:[%s1612_s2 + $0x8] sm:$0xff] }
   0x5   :  { %1099 = vmatprep.mubr.msk.f32.mxu1 %vm46_vm0, %v123_v2  ;;  %1098 = vmatpush3.xpose.msk.msra.mxu1 %vm46_vm0, %v1373_v1  ;;  %v139_v6 = vld [vmem:[%s1612_s2] sm:$0xff]  ;;  %v141_v9 = vld [vmem:[%s1612_s2 + $0x10] sm:$0xff]  ;;  %v142_v11 = vld [vmem:[%s1612_s2 + $0x18] sm:$0xff] }
   0x6   :  { %1272 = vset.pattern.permute.xlu1 %v1297_v4  ;;  %157 = vperm.xlu0 %1271, %v139_v6   ;;  %v127_v10 = vld [vmem:[%s1611_s1 + $0x20] sm:$0xff]  ;;  %v128_v12 = vld [vmem:[%s1611_s1 + $0x28] sm:$0xff]  ;;  %v129_v14 = vld [vmem:[%s1611_s1 + $0x30] sm:$0xff] }
   0x7   :  { %167 = vperm.xlu1 %1272, %v141_v9   ;;  %v143_v13 = vld [vmem:[%s1612_s2 + $0x20] sm:$0xff]  ;;  %v144_v15 = vld [vmem:[%s1612_s2 + $0x28] sm:$0xff]  ;;  %v130_v16 = vld [vmem:[%s1611_s1 + $0x38] sm:$0xff] }
   0x8   :  { %1100 = vmatmul.mubr.msk.f32.vlgmr.msra.gmra.mrb[0].mxu1 %vm46_vm0, %v124_v3  ;;  %v145_v17 = vld [vmem:[%s1612_s2 + $0x30] sm:$0xff]  ;;  %v131_v18 = vld [vmem:[%s1611_s1 + $0x40] sm:$0xff]  ;;  %v146_v19 = vld [vmem:[%s1612_s2 + $0x38] sm:$0xff] }
   0x9   :  { %1102 = vmatprep.mubr.msk.f32.mxu1 %vm46_vm0, %v125_v5 }
   0xa   :  { %162 = vperm.xlu0 %1271, %v140_v8  }
   0xb   :  { %172 = vperm.xlu1 %1272, %v142_v11  }
   0xc   :  { %1103 = vmatmul.mubr.msk.f32.gmra.mrb[2].mxu1 %vm46_vm0, %v126_v7 }
   0xd   :  { %1105 = vmatprep.mubr.msk.f32.mxu1 %vm46_vm0, %v127_v10 }
   0xe   :  { %177 = vperm.xlu0 %1271, %v143_v13  }
   0xf   :  { %182 = vperm.xlu1 %1272, %v144_v15  }
  0x10   :  { %1106 = vmatmul.mubr.msk.f32.gmra.mrb[4].mxu1 %vm46_vm0, %v128_v12 }
  0x11   :  { %1108 = vmatprep.mubr.msk.f32.mxu1 %vm46_vm0, %v129_v14 }
  0x12   :  { %19 = vsyncpa [#allocation4], 0  ;;  %187 = vperm.xlu0 %1271, %v145_v17   ;;  %v132_v20 = vld [vmem:[%s1611_s1 + $0x48] sm:$0xff]  ;;  %v147_v21 = vld [vmem:[%s1612_s2 + $0x40] sm:$0xff]  ;;  %v1298_v50 = vmov 0.0   ;;  %vm1299_vm1 = vmmov 0  }
  0x13   :  { %v133_v22 = vld [vmem:[%s1611_s1 + $0x50] sm:$0xff]  ;;  %192 = vperm.xlu1 %1272, %v146_v19   ;;  %v148_v23 = vld [vmem:[%s1612_s2 + $0x48] sm:$0xff]  ;;  %v134_v24 = vld [vmem:[%s1611_s1 + $0x58] sm:$0xff]  ;;  %1092 = vmatprep.subr.mxu0 %v1298_v50  ;;  %s1301_s14 = smov [#allocation3]  }
  0x14   :  { %1109 = vmatmul.mubr.msk.f32.gmra.mrb[6].mxu1 %vm46_vm0, %v130_v16  ;;  %v149_v25 = vld [vmem:[%s1612_s2 + $0x50] sm:$0xff]  ;;  %v135_v26 = vld [vmem:[%s1611_s1 + $0x60] sm:$0xff]  ;;  %v150_v27 = vld [vmem:[%s1612_s2 + $0x58] sm:$0xff]  ;;  %1093 = vmatpush3.xpose.msk.msra.mxu0 %vm46_vm0, %v1373_v1 }
  0x15   :  { %1111 = vmatprep.mubr.msk.f32.mxu1 %vm46_vm0, %v131_v18  ;;  %v136_v28 = vld [vmem:[%s1611_s1 + $0x68] sm:$0xff]  ;;  %v151_v29 = vld [vmem:[%s1612_s2 + $0x60] sm:$0xff]  ;;  %v137_v30 = vld [vmem:[%s1611_s1 + $0x70] sm:$0xff]  ;;  %1094 = vmatprep.mubr.msk.f32.mxu0 %vm1299_vm1, %v1298_v50 }
  0x16   :  { %197 = vperm.xlu0 %1271, %v147_v21   ;;  %v152_v31 = vld [vmem:[%s1612_s2 + $0x68] sm:$0xff]  ;;  %v138_v32 = vld [vmem:[%s1611_s1 + $0x78] sm:$0xff]  ;;  %v153_v33 = vld [vmem:[%s1612_s2 + $0x70] sm:$0xff] }
  0x17   :  { %202 = vperm.xlu1 %1272, %v148_v23   ;;  %v154_v34 = vld [vmem:[%s1612_s2 + $0x78] sm:$0xff]  ;;  %v484_v35 = vld [vmem:[%s1614_s4] sm:$0xff]  ;;  %v485_v36 = vld [vmem:[%s1614_s4 + $0x8] sm:$0xff] }
  0x18   :  { %1112 = vmatmul.mubr.msk.f32.gmra.mrb[8].mxu1 %vm46_vm0, %v132_v20  ;;  %v486_v37 = vld [vmem:[%s1614_s4 + $0x10] sm:$0xff]  ;;  %v487_v38 = vld [vmem:[%s1614_s4 + $0x18] sm:$0xff]  ;;  %v488_v39 = vld [vmem:[%s1614_s4 + $0x20] sm:$0xff] }
  0x19   :  { %1114 = vmatprep.mubr.msk.f32.mxu1 %vm46_vm0, %v133_v22  ;;  %v489_v40 = vld [vmem:[%s1614_s4 + $0x28] sm:$0xff]  ;;  %v490_v41 = vld [vmem:[%s1614_s4 + $0x30] sm:$0xff]  ;;  %v491_v42 = vld [vmem:[%s1614_s4 + $0x38] sm:$0xff] }
  0x1a   :  { %207 = vperm.xlu0 %1271, %v149_v25   ;;  %v665_v43 = vld [vmem:[%s1616_s6] sm:$0xff]  ;;  %v666_v44 = vld [vmem:[%s1616_s6 + $0x8] sm:$0xff]  ;;  %v667_v45 = vld [vmem:[%s1616_s6 + $0x10] sm:$0xff] }
  0x1b   :  { %212 = vperm.xlu1 %1272, %v150_v27   ;;  %v668_v46 = vld [vmem:[%s1616_s6 + $0x18] sm:$0xff]  ;;  %v801_v47 = vld [vmem:[%s1618_s8] sm:$0xff]  ;;  %v802_v48 = vld [vmem:[%s1618_s8 + $0x8] sm:$0xff] }
  0x1c   :  { %1115 = vmatmul.mubr.msk.f32.gmra.mrb[10].mxu1 %vm46_vm0, %v134_v24  ;;  %v975_v49 = vld [vmem:[#allocation2] sm:$0x1] }
  0x1d   :  { %1117 = vmatprep.mubr.msk.f32.mxu1 %vm46_vm0, %v135_v26  ;;  %v45_v51 = vld [vmem:[%s1620_s10] sm:$0x1]  ;;  %s994_s10 = sshll.u32 %s1301_s14, 4  ;;  %s995_s10 = int_to_ptr.vmem [resolvable:$true] %s994_s10 }
  0x1e   :  { %217 = vperm.xlu0 %1271, %v151_v29   ;;  %1095 = vmatmul.mubr.msk.f32.vlgmr.msra.gmra.mrb[0].mxu0 %vm46_vm0, %v45_v51  ;;  %v476_v52 = vld [vmem:[%s1613_s3] sm:$0xff]  ;;  %s1273_s2 = scalar_lea.vmem %s995_s10, 16  ;;  %p1278_p1 = scmp.lt.s32.totalorder %s995_s10, %s995_s10 }
  0x1f   :  { %222 = vperm.xlu1 %1272, %v152_v31   ;;  %1155 = vmatprep.mubr.f32.mxu0 %v476_v52  ;;  %p1274_p0 = scmp.ne.s32.totalorder %s995_s10, %s1273_s2 }
  0x20   :  { %1118 = vmatmul.mubr.msk.f32.gmra.mrb[12].mxu1 %vm46_vm0, %v136_v28 }
  0x21   :  { %1120 = vmatprep.mubr.msk.f32.mxu1 %vm46_vm0, %v137_v30 }
  0x22   :  { %227 = vperm.xlu0 %1271, %v153_v33  }
  0x23   :  { %232 = vperm.xlu1 %1272, %v154_v34  }
  0x24   :  { %1121 = vmatmul.mubr.msk.f32.gmra.mrb[14].mxu1 %vm46_vm0, %v138_v32 }
  0x26   :  { %494 = vperm.xlu0 %1271, %v484_v35  }
  0x27   :  { %499 = vperm.xlu1 %1272, %v485_v36  }
  0x2a   :  { %504 = vperm.xlu0 %1271, %v486_v37  }
  0x2b   :  { %509 = vperm.xlu1 %1272, %v487_v38  }
  0x2e   :  { %514 = vperm.xlu0 %1271, %v488_v39  }
  0x2f   :  { %519 = vperm.xlu1 %1272, %v489_v40  }
  0x32   :  { %524 = vperm.xlu0 %1271, %v490_v41  }
  0x33   :  { %529 = vperm.xlu1 %1272, %v491_v42  }
  0x36   :  { %671 = vperm.xlu0 %1271, %v665_v43  }
  0x37   :  { %676 = vperm.xlu1 %1272, %v666_v44  }
  0x3a   :  { %681 = vperm.xlu0 %1271, %v667_v45  }
  0x3b   :  { %686 = vperm.xlu1 %1272, %v668_v46  }
  0x3e   :  { %805 = vperm.xlu0 %1271, %v801_v47  }
  0x3f   :  { %810 = vperm.xlu1 %1272, %v802_v48  }
  0x42   :  { %978 = vperm.xlu0 %1271, %v975_v49  }
  0x85   :  { %v158_v54 = vpop.permute.xlu0 %157 }
  0x86   :  { %v168_v53 = vpop.permute.xlu1 %167 }
  0x89   :  { %v163_v56 = vpop.permute.xlu0 %162 }
  0x8a   :  { %v173_v55 = vpop.permute.xlu1 %172 }
  0x8d   :  { %v178_v58 = vpop.permute.xlu0 %177 }
  0x8e   :  { %v183_v57 = vpop.permute.xlu1 %182 }
  0x91   :  { %v188_v3 = vpop.permute.xlu0 %187 }
  0x92   :  { %v193_v0 = vpop.permute.xlu1 %192 }
  0x95   :  { %v198_v19 = vpop.permute.xlu0 %197 }
  0x96   :  { %v203_v16 = vpop.permute.xlu1 %202 }
  0x99   :  { %v208_v34 = vpop.permute.xlu0 %207 }
  0x9a   :  { %v213_v31 = vpop.permute.xlu1 %212 }
  0x9d   :  { %v218_v51 = vpop.permute.xlu0 %217 }
  0x9e   :  { %v223_v47 = vpop.permute.xlu1 %222 }
  0xdb   :  { %v1101_v59 = vpop.f32.mrb[0].mxu1 }
  0xdc   :  { %v355_v60 = vadd.f32 %v1101_v59, %v163_v56  ;;  %v349_v61 = vpop.f32.mrb[1].mxu1 }
  0xdd   :  { %v350_v62 = vadd.f32 %v349_v61, %v158_v54 }
  0xde   :  { %vm429_vm2 = vcmp.gt.f32.partialorder %v355_v60, 0.0  ;;  %v445_v63 = vmul.f32 0.01, %v355_v60 }
  0xdf   :  { %vm428_vm3 = vcmp.gt.f32.partialorder %v350_v62, 0.0  ;;  %v444_v1 = vmul.f32 0.01, %v350_v62  ;;  %v1104_v2 = vpop.f32.mrb[2].mxu1 }
  0xe0   :  { %v365_v4 = vadd.f32 %v1104_v2, %v173_v55  ;;  %v359_v5 = vpop.f32.mrb[3].mxu1  ;;  %v461_v6 = vsel %vm429_vm2, %v355_v60, %v445_v63  ;;  %v233_v63 = vpop.permute.xlu1 %232 }
  0xe1   :  { %v360_v7 = vadd.f32 %v359_v5, %v168_v53  ;;  %v460_v8 = vsel %vm428_vm3, %v350_v62, %v444_v1  ;;  %v228_v2 = vpop.permute.xlu0 %227 }
  0xe2   :  { %vm431_vm4 = vcmp.gt.f32.partialorder %v365_v4, 0.0  ;;  %v447_v9 = vmul.f32 0.01, %v365_v4  ;;  %v1207_v10 = vpack.c.bf16 %v461_v6, %v460_v8 }
  0xe3   :  { %vm430_vm5 = vcmp.gt.f32.partialorder %v360_v7, 0.0  ;;  %v446_v11 = vmul.f32 0.01, %v360_v7  ;;  %v1107_v12 = vpop.f32.mrb[4].mxu1 }
  0xe4   :  { %v375_v13 = vadd.f32 %v1107_v12, %v183_v57  ;;  %v369_v14 = vpop.f32.mrb[5].mxu1  ;;  %1208 = vmatprep.subr.bf16.mxu0 %v1207_v10  ;;  %v463_v15 = vsel %vm431_vm4, %v365_v4, %v447_v9  ;;  %vm689_vm4 = vcmask 523264  }
  0xe5   :  { %v370_v17 = vadd.f32 %v369_v14, %v178_v58  ;;  %1210 = vmatpush3.bf16.msra.mxu0 %v1207_v10  ;;  %v462_v18 = vsel %vm430_vm5, %v360_v7, %v446_v11  ;;  %v477_v14 = vld [vmem:[%s1613_s3 + $0x8] sm:$0xff] }
  0xe6   :  { %vm433_vm6 = vcmp.gt.f32.partialorder %v375_v13, 0.0  ;;  %v449_v20 = vmul.f32 0.01, %v375_v13  ;;  %v1211_v21 = vpack.c.bf16 %v463_v15, %v462_v18  ;;  %v478_v15 = vld [vmem:[%s1613_s3 + $0x10] sm:$0xff]  ;;  %v481_v18 = vld [vmem:[%s1613_s3 + $0x28] sm:$0xff] }
  0xe7   :  { %vm432_vm7 = vcmp.gt.f32.partialorder %v370_v17, 0.0  ;;  %v448_v22 = vmul.f32 0.01, %v370_v17  ;;  %v1110_v23 = vpop.f32.mrb[6].mxu1 }
  0xe8   :  { %v385_v24 = vadd.f32 %v1110_v23, %v193_v0  ;;  %v379_v25 = vpop.f32.mrb[7].mxu1  ;;  %1212 = vmatprep.subr.bf16.mxu0 %v1211_v21  ;;  %v465_v26 = vsel %vm433_vm6, %v375_v13, %v449_v20  ;;  %v483_v20 = vld [vmem:[%s1613_s3 + $0x38] sm:$0xff]  ;;  %v661_v23 = vld [vmem:[%s1615_s5] sm:$0xff] }
  0xe9   :  { %v380_v27 = vadd.f32 %v379_v25, %v188_v3  ;;  %1214 = vmatpush3.bf16.msra.mxu0 %v1211_v21  ;;  %v464_v28 = vsel %vm432_vm7, %v370_v17, %v448_v22  ;;  %v480_v17 = vld [vmem:[%s1613_s3 + $0x20] sm:$0xff]  ;;  %1183 = vmatprep.mubr.msk.f32.mxu1 %vm689_vm4, %v661_v23  ;;  %v495_v25 = vpop.permute.xlu0 %494 }
  0xea   :  { %vm435_vm8 = vcmp.gt.f32.partialorder %v385_v24, 0.0  ;;  %v451_v29 = vmul.f32 0.01, %v385_v24  ;;  %v1215_v30 = vpack.c.bf16 %v465_v26, %v464_v28 }
  0xeb   :  { %vm434_vm9 = vcmp.gt.f32.partialorder %v380_v27, 0.0  ;;  %v450_v32 = vmul.f32 0.01, %v380_v27  ;;  %v1113_v33 = vpop.f32.mrb[8].mxu1 }
  0xec   :  { %v395_v35 = vadd.f32 %v1113_v33, %v203_v16  ;;  %v389_v36 = vpop.f32.mrb[9].mxu1  ;;  %1216 = vmatprep.subr.bf16.mxu0 %v1215_v30  ;;  %v467_v37 = vsel %vm435_vm8, %v385_v24, %v451_v29  ;;  %v479_v16 = vld [vmem:[%s1613_s3 + $0x18] sm:$0xff]  ;;  %v500_v24 = vpop.permute.xlu1 %499 }
  0xed   :  { %v390_v38 = vadd.f32 %v389_v36, %v198_v19  ;;  %1218 = vmatpush3.bf16.msra.mxu0 %v1215_v30  ;;  %v466_v39 = vsel %vm434_vm9, %v380_v27, %v450_v32  ;;  %v482_v19 = vld [vmem:[%s1613_s3 + $0x30] sm:$0xff]  ;;  %v505_v28 = vpop.permute.xlu0 %504 }
  0xee   :  { %vm437_vm10 = vcmp.gt.f32.partialorder %v395_v35, 0.0  ;;  %v453_v40 = vmul.f32 0.01, %v395_v35  ;;  %v1219_v41 = vpack.c.bf16 %v467_v37, %v466_v39 }
  0xef   :  { %vm436_vm11 = vcmp.gt.f32.partialorder %v390_v38, 0.0  ;;  %v452_v42 = vmul.f32 0.01, %v390_v38  ;;  %v1116_v43 = vpop.f32.mrb[10].mxu1 }
  0xf0   :  { %v405_v44 = vadd.f32 %v1116_v43, %v213_v31  ;;  %v399_v45 = vpop.f32.mrb[11].mxu1  ;;  %1220 = vmatprep.subr.bf16.mxu0 %v1219_v41  ;;  %v469_v46 = vsel %vm437_vm10, %v395_v35, %v453_v40  ;;  %v510_v26 = vpop.permute.xlu1 %509 }
  0xf1   :  { %v400_v48 = vadd.f32 %v399_v45, %v208_v34  ;;  %1222 = vmatpush3.bf16.msra.mxu0 %v1219_v41  ;;  %v468_v49 = vsel %vm436_vm11, %v390_v38, %v452_v42  ;;  %v1566_v21 = vpop.f32.mrb[0].mxu0  ;;  %v515_v41 = vpop.permute.xlu0 %514 }
  0xf2   :  { %vm439_vm12 = vcmp.gt.f32.partialorder %v405_v44, 0.0  ;;  %v455_v52 = vmul.f32 0.01, %v405_v44  ;;  %v1223_v53 = vpack.c.bf16 %v469_v46, %v468_v49  ;;  %v1096_v22 = vpop.f32.mrb[1].mxu0 }
  0xf3   :  { %vm438_vm13 = vcmp.gt.f32.partialorder %v400_v48, 0.0  ;;  %v454_v54 = vmul.f32 0.01, %v400_v48  ;;  %v1119_v55 = vpop.f32.mrb[12].mxu1 }
  0xf4   :  { %v415_v56 = vadd.f32 %v1119_v55, %v223_v47  ;;  %v409_v57 = vpop.f32.mrb[13].mxu1  ;;  %1224 = vmatprep.subr.bf16.mxu0 %v1223_v53  ;;  %v471_v58 = vsel %vm439_vm12, %v405_v44, %v455_v52  ;;  %v520_v38 = vpop.permute.xlu1 %519 }
  0xf5   :  { %v410_v59 = vadd.f32 %v409_v57, %v218_v51  ;;  %1226 = vmatpush3.bf16.msra.mxu0 %v1223_v53  ;;  %v470_v60 = vsel %vm438_vm13, %v400_v48, %v454_v54  ;;  %v525_v57 = vpop.permute.xlu0 %524 }
  0xf6   :  { %vm441_vm14 = vcmp.gt.f32.partialorder %v415_v56, 0.0  ;;  %v457_v61 = vmul.f32 0.01, %v415_v56  ;;  %v1227_v62 = vpack.c.bf16 %v471_v58, %v470_v60 }
  0xf7   :  { %vm440_vm15 = vcmp.gt.f32.partialorder %v410_v59, 0.0  ;;  %v456_v0 = vmul.f32 0.01, %v410_v59  ;;  %v1122_v1 = vpop.f32.mrb[14].mxu1 }
  0xf8   :  { %v425_v3 = vadd.f32 %v1122_v1, %v233_v63  ;;  %v419_v4 = vpop.f32.mrb[15].mxu1  ;;  %1228 = vmatprep.subr.bf16.mxu0 %v1227_v62  ;;  %v473_v5 = vsel %vm441_vm14, %v415_v56, %v457_v61  ;;  %v530_v54 = vpop.permute.xlu1 %529 }
  0xf9   :  { %v420_v6 = vadd.f32 %v419_v4, %v228_v2  ;;  %1230 = vmatpush3.bf16.msra.mxu0 %v1227_v62  ;;  %v472_v7 = vsel %vm440_vm15, %v410_v59, %v456_v0 }
  0xfa   :  { %vm443_vm2 = vcmp.gt.f32.partialorder %v425_v3, 0.0  ;;  %v459_v8 = vmul.f32 0.01, %v425_v3  ;;  %v1231_v9 = vpack.c.bf16 %v473_v5, %v472_v7  ;;  %v662_v5 = vld [vmem:[%s1615_s5 + $0x8] sm:$0xff]  ;;  %v664_v7 = vld [vmem:[%s1615_s5 + $0x18] sm:$0xff] }
  0xfb   :  { %vm442_vm3 = vcmp.gt.f32.partialorder %v420_v6, 0.0  ;;  %v458_v10 = vmul.f32 0.01, %v420_v6 }
  0xfc   :  { %1232 = vmatprep.subr.bf16.mxu0 %v1231_v9  ;;  %v475_v11 = vsel %vm443_vm2, %v425_v3, %v459_v8  ;;  %v799_v8 = vld [vmem:[%s1617_s7] sm:$0xff] }
  0xfd   :  { %1234 = vmatpush3.bf16.msra.mxu0 %v1231_v9  ;;  %v474_v12 = vsel %vm442_vm3, %v420_v6, %v458_v10  ;;  %v663_v6 = vld [vmem:[%s1615_s5 + $0x10] sm:$0xff]  ;;  %v677_v9 = vpop.permute.xlu1 %676  ;;  %v672_v10 = vpop.permute.xlu0 %671 }
  0xfe   :  { %v1235_v13 = vpack.c.bf16 %v475_v11, %v474_v12 }
 0x100   :  { %1236 = vmatprep.subr.bf16.mxu0 %v1235_v13 }
 0x101   :  { %1238 = vmatpush3.bf16.msra.mxu0 %v1235_v13 }
 0x104   :  { %1156 = vmatmul.mubr.f32.vlgmr.msra.gmra.mrb[2].mxu0 %v477_v14 }
 0x105   :  { %1158 = vmatprep.mubr.f32.mxu0 %v478_v15 }
 0x108   :  { %1159 = vmatmul.mubr.f32.gmra.mrb[4].mxu0 %v479_v16  ;;  %v687_v16 = vpop.permute.xlu1 %686 }
 0x109   :  { %1161 = vmatprep.mubr.f32.mxu0 %v480_v17 }
 0x10c   :  { %1162 = vmatmul.mubr.f32.gmra.mrb[6].mxu0 %v481_v18 }
 0x10d   :  { %1164 = vmatprep.mubr.f32.mxu0 %v482_v19  ;;  %v682_v19 = vpop.permute.xlu0 %681 }
 0x110   :  { %1165 = vmatmul.mubr.f32.gmra.mrb[8].mxu0 %v483_v20 }
 0x1d7   :  { %v1157_v27 = vpop.f32.mrb[2].mxu0 }
 0x1d8   :  { %v604_v29 = vadd.f32 %v1157_v27, %v500_v24  ;;  %v598_v30 = vpop.f32.mrb[3].mxu0 }
 0x1d9   :  { %v599_v31 = vadd.f32 %v598_v30, %v495_v25 }
 0x1da   :  { %vm638_vm5 = vcmp.gt.f32.partialorder %v604_v29, 0.0  ;;  %v646_v32 = vmul.f32 0.01, %v604_v29 }
 0x1db   :  { %vm637_vm6 = vcmp.gt.f32.partialorder %v599_v31, 0.0  ;;  %v645_v33 = vmul.f32 0.01, %v599_v31  ;;  %v1160_v34 = vpop.f32.mrb[4].mxu0 }
 0x1dc   :  { %v614_v35 = vadd.f32 %v1160_v34, %v510_v26  ;;  %v608_v36 = vpop.f32.mrb[5].mxu0  ;;  %v654_v37 = vsel %vm638_vm5, %v604_v29, %v646_v32  ;;  %v800_v32 = vld [vmem:[%s1617_s7 + $0x8] sm:$0xff]  ;;  %v811_v34 = vpop.permute.xlu1 %810 }
 0x1dd   :  { %v609_v39 = vadd.f32 %v608_v36, %v505_v28  ;;  %v653_v40 = vsel %vm637_vm6, %v599_v31, %v645_v33  ;;  %v1300_v33 = vmov 0.0|0.0   ;;  %v806_v36 = vpop.permute.xlu0 %805 }
 0x1de   :  { %vm640_vm7 = vcmp.gt.f32.partialorder %v614_v35, 0.0  ;;  %v648_v42 = vmul.f32 0.01, %v614_v35  ;;  %v1239_v43 = vpack.c.bf16 %v654_v37, %v653_v40 }
 0x1df   :  { %vm639_vm8 = vcmp.gt.f32.partialorder %v609_v39, 0.0  ;;  %v647_v44 = vmul.f32 0.01, %v609_v39  ;;  %v1163_v45 = vpop.f32.mrb[6].mxu0 }
 0x1e0   :  { %v624_v46 = vadd.f32 %v1163_v45, %v520_v38  ;;  %v618_v47 = vpop.f32.mrb[7].mxu0  ;;  %1240 = vmatprep.subr.bf16.mxu1 %v1239_v43  ;;  %v656_v48 = vsel %vm640_vm7, %v614_v35, %v648_v42  ;;  %v981_v45 = vlaneseq }
 0x1e1   :  { %v619_v49 = vadd.f32 %v618_v47, %v515_v41  ;;  %1242 = vmatpush3.bf16.msra.mxu1 %v1239_v43  ;;  %v655_v51 = vsel %vm639_vm8, %v609_v39, %v647_v44 }
 0x1e2   :  { %vm642_vm9 = vcmp.gt.f32.partialorder %v624_v46, 0.0  ;;  %v650_v52 = vmul.f32 0.01, %v624_v46  ;;  %v1243_v53 = vpack.c.bf16 %v656_v48, %v655_v51  ;;  %v979_v48 = vpop.permute.xlu0 %978 }
 0x1e3   :  { %vm641_vm10 = vcmp.gt.f32.partialorder %v619_v49, 0.0  ;;  %v649_v55 = vmul.f32 0.01, %v619_v49  ;;  %v1166_v56 = vpop.f32.mrb[8].mxu0 }
 0x1e4   :  { %v634_v58 = vadd.f32 %v1166_v56, %v530_v54  ;;  %v628_v59 = vpop.f32.mrb[9].mxu0  ;;  %1244 = vmatprep.subr.bf16.mxu1 %v1243_v53  ;;  %v658_v60 = vsel %vm642_vm9, %v624_v46, %v650_v52  ;;  %v982_v46 = vshrl.u32 %v981_v45, 7 }
 0x1e5   :  { %v629_v61 = vadd.f32 %v628_v59, %v525_v57  ;;  %1246 = vmatpush3.bf16.msra.mxu1 %v1243_v53  ;;  %v657_v62 = vsel %vm641_vm10, %v619_v49, %v649_v55 }
 0x1e6   :  { %vm644_vm11 = vcmp.gt.f32.partialorder %v634_v58, 0.0  ;;  %v652_v63 = vmul.f32 0.01, %v634_v58  ;;  %v1247_v0 = vpack.c.bf16 %v658_v60, %v657_v62  ;;  %v983_v47 = vsub.s32 0, %v982_v46 }
 0x1e7   :  { %vm643_vm12 = vcmp.gt.f32.partialorder %v629_v61, 0.0  ;;  %v651_v1 = vmul.f32 0.01, %v629_v61 }
 0x1e8   :  { %1248 = vmatprep.subr.bf16.mxu1 %v1247_v0  ;;  %v660_v2 = vsel %vm644_vm11, %v634_v58, %v652_v63  ;;  %v984_v51 = vrot.slane %v979_v48, %v983_v47 }
 0x1e9   :  { %1250 = vmatpush3.bf16.msra.mxu1 %v1247_v0  ;;  %v659_v3 = vsel %vm643_vm12, %v629_v61, %v651_v1 }
 0x1ea   :  { %v1251_v4 = vpack.c.bf16 %v660_v2, %v659_v3 }
 0x1ec   :  { %1252 = vmatprep.subr.bf16.mxu1 %v1251_v4 }
 0x1ed   :  { %1254 = vmatpush3.bf16.msra.mxu1 %v1251_v4 }
 0x1f0   :  { %1184 = vmatmul.mubr.msk.f32.vlgmr.msra.gmra.mrb[16].mxu1 %vm689_vm4, %v662_v5 }
 0x1f1   :  { %1186 = vmatprep.mubr.msk.f32.mxu1 %vm689_vm4, %v663_v6 }
 0x1f4   :  { %1187 = vmatmul.mubr.msk.f32.gmra.mrb[18].mxu1 %vm689_vm4, %v664_v7 }
 0x1f5   :  { %1197 = vmatprep.mubr.msk.f32.mxu1 %vm46_vm0, %v799_v8 }
 0x2c3   :  { %v1185_v11 = vpop.f32.mrb[16].mxu1 }
 0x2c4   :  { %v774_v12 = vadd.f32 %v1185_v11, %v677_v9  ;;  %v768_v13 = vpop.f32.mrb[17].mxu1 }
 0x2c5   :  { %v769_v14 = vadd.f32 %v768_v13, %v672_v10 }
 0x2c6   :  { %vm788_vm13 = vcmp.gt.f32.partialorder %v774_v12, 0.0  ;;  %v792_v15 = vmul.f32 0.01, %v774_v12 }
 0x2c7   :  { %vm787_vm14 = vcmp.gt.f32.partialorder %v769_v14, 0.0  ;;  %v791_v17 = vmul.f32 0.01, %v769_v14  ;;  %v1188_v18 = vpop.f32.mrb[18].mxu1 }
 0x2c8   :  { %v784_v20 = vadd.f32 %v1188_v18, %v687_v16  ;;  %v778_v22 = vpop.f32.mrb[19].mxu1  ;;  %v796_v23 = vsel %vm788_vm13, %v774_v12, %v792_v15 }
 0x2c9   :  { %v779_v24 = vadd.f32 %v778_v22, %v682_v19  ;;  %v795_v25 = vsel %vm787_vm14, %v769_v14, %v791_v17 }
 0x2ca   :  { %vm790_vm15 = vcmp.gt.f32.partialorder %v784_v20, 0.0  ;;  %v794_v26 = vmul.f32 0.01, %v784_v20  ;;  %v1255_v27 = vpack.c.bf16 %v796_v23, %v795_v25 }
 0x2cb   :  { %vm789_vm2 = vcmp.gt.f32.partialorder %v779_v24, 0.0  ;;  %v793_v28 = vmul.f32 0.01, %v779_v24 }
 0x2cc   :  { %1256 = vmatprep.subr.bf16.mxu1 %v1255_v27  ;;  %v798_v29 = vsel %vm790_vm15, %v784_v20, %v794_v26 }
 0x2cd   :  { %1258 = vmatpush3.bf16.msra.mxu1 %v1255_v27  ;;  %v797_v30 = vsel %vm789_vm2, %v779_v24, %v793_v28 }
 0x2ce   :  { %v1259_v31 = vpack.c.bf16 %v798_v29, %v797_v30 }
 0x2d0   :  { %1260 = vmatprep.subr.bf16.mxu1 %v1259_v31 }
 0x2d1   :  { %1262 = vmatpush3.bf16.msra.mxu1 %v1259_v31 }
 0x2d2   :  { %1263 = vmatprep.subr.bf16.mxu1 %v1300_v33 }
 0x2d4   :  { %1198 = vmatmul.mubr.msk.f32.vlgmr.msra.gmra.mrb[20].mxu1 %vm46_vm0, %v800_v32  ;;  %vm901_vm0 = vcmask 130048  }
 0x2d5   :  { %1204 = vmatprep.mubr.msk.f32.mxu1 %vm1299_vm1, %v1298_v50  ;;  %v900_v50 = vld [vmem:[%s1619_s9] sm:$0x1]  ;;  %vm986_vm1 = vcmask 57344   ;;  %s1277_s9 = scalar_lea.vmem %s995_s10, 32 }
 0x2d6   :  { %p1279_p2 = scmp.lt.s32.totalorder %s1277_s9, %s1273_s2 }
 0x2d8   :  { %p1280_p3 = por %p1279_p2, %p1278_p1 }
 0x2da   :  { %p1281_p4 = pnand %p1280_p3, %p1274_p0 }
 0x3a7   :  { %v1199_v35 = vpop.f32.mrb[20].mxu1 }
 0x3a8   :  { %v891_v37 = vadd.f32 %v1199_v35, %v811_v34  ;;  %v885_v38 = vpop.f32.mrb[21].mxu1 }
 0x3a9   :  { %v886_v39 = vadd.f32 %v885_v38, %v806_v36 }
 0x3aa   :  { %vm895_vm3 = vcmp.gt.f32.partialorder %v891_v37, 0.0  ;;  %v897_v40 = vmul.f32 0.01, %v891_v37 }
 0x3ab   :  { %vm894_vm4 = vcmp.gt.f32.partialorder %v886_v39, 0.0  ;;  %v896_v41 = vmul.f32 0.01, %v886_v39 }
 0x3ac   :  { %v899_v42 = vsel %vm895_vm3, %v891_v37, %v897_v40 }
 0x3ad   :  { %v898_v43 = vsel %vm894_vm4, %v886_v39, %v896_v41 }
 0x3ae   :  { %v1264_v44 = vpack.c.bf16 %v899_v42, %v898_v43 }
 0x3b0   :  { %1265 = vmatpush3.bf16.msra.mxu1 %v1264_v44 }
 0x3b3   :  { %1205 = vmatmul.mubr.msk.f32.vlgmr.msra.gmra.mrb[22].mxu1 %vm901_vm0, %v900_v50 }
 0x486   :  { %v971_v49 = vpop.f32.mrb[22].mxu1 }
 0x487   :  { %v972_v52 = vadd.f32 %v971_v49, %v1566_v21  ;;  %v1206_v53 = vpop.f32.mrb[23].mxu1 }
 0x489   :  { %v985_v54 = vadd.f32 %v984_v51, %v972_v52 }
 0x48b   :  { %987 = vst.msk [vmem:[#allocation3] sm:$0x1] %vm986_vm1, %v985_v54 }
 0x48c   :  { %1284 = shalt.err (!%p1281_p4)
}
 0x48d   :  { %s1285_s17 = scalar_lea.hbm %s1622_s12, 16 }
 0x48e   :  { %p1286_p5 = scmp.ne.s32.totalorder %s1622_s12, %s1285_s17  ;;  %p1289_p6 = scmp.lt.u32.totalorder %s1285_s17, %s1622_s12 }
 0x490   :  { %p1291_p7 = pnand %p1289_p6, %p1286_p5 }
 0x492   :  { %1294 = shalt.err (!%p1291_p7)
}
 0x493   :  { %997 = dma.vmem_to_hbm [thread:$0]  %s995_s10, 16, %s1622_s12, [#allocation4]  }
 0x494   :  { %1295 = dma.done.wait [#allocation4], 16  }
 0x495   :  { %1296 = vsyncadd [#allocation4], 4294967280 }
 0x496   :  { %1001 = vsyncpa [#allocation4], 1 }

</bundles_post_ra>
